<compile_context>
chip_gen: v6e
topology: v6e:2x2x1
jax: 0.10.0
libtpu: 0.0.40
codegen_flags: <defaults>
</compile_context>

<pallas_src>
import math
import functools

import jax
import jax.numpy as jnp
from jax.experimental import pallas as pl
from jax.experimental.pallas import tpu as pltpu


def _attention_core(Q, K, V, wo_ref, bo_ref, o_ref, *, h, d_k, compute_dtype):
    """Scaled-dot-product attention given f32 projections Q (TQ, D), K/V (S, D)."""
    TQ = Q.shape[0]
    S = K.shape[0]
    D = h * d_k

    # Fold 1/sqrt(d_k) into Q once (TQ*D mults instead of h*TQ*S on the scores).
    Qh = (Q * (1.0 / math.sqrt(d_k))).astype(compute_dtype).reshape(TQ, h, d_k)
    Kh = K.astype(compute_dtype).reshape(S, h, d_k)
    Vh = V.astype(compute_dtype).reshape(S, h, d_k)
    Qh = Qh.transpose(1, 0, 2)          # (h, TQ, d_k)
    Kh = Kh.transpose(1, 0, 2)          # (h, S,  d_k)
    Vh = Vh.transpose(1, 0, 2)          # (h, S,  d_k)

    # Batched over heads; K consumed untransposed (contraction over d_k on MXU).
    scores = jnp.einsum("hqd,hkd->hqk", Qh, Kh,
                        preferred_element_type=jnp.float32)      # (h, TQ, S) f32

    # Numerically-stable softmax over keys, all in f32.
    m = jnp.max(scores, axis=-1, keepdims=True)
    e = jnp.exp(scores - m)
    p = e * pl.reciprocal(jnp.sum(e, axis=-1, keepdims=True), approx=True)

    # Per-head context; single transpose back == torch transpose(1,2)+view.
    ctx = jnp.einsum("hqk,hkd->hqd", p.astype(compute_dtype), Vh,
                     preferred_element_type=jnp.float32)          # (h, TQ, d_k)
    ctx = ctx.transpose(1, 0, 2).reshape(TQ, D)

    out = jnp.dot(ctx.astype(compute_dtype), wo_ref[...],
                  preferred_element_type=jnp.float32) + bo_ref[...]
    o_ref[0] = out.astype(o_ref.dtype)


def mha_kernel(q_ref, k_ref, v_ref, wqkv_ref, bqkv_ref, wo_ref, bo_ref, o_ref,
               *, h, d_k):
    """General path: distinct q/k/v; packed (D, 3D) projection weight."""
    D = h * d_k
    cdt = wqkv_ref.dtype                      # bf16 compute dtype for the MXU
    wqkv = wqkv_ref[...]
    bqkv = bqkv_ref[...]                      # f32

    q = q_ref[0].astype(cdt)                  # (TQ, D)
    k = k_ref[0].astype(cdt)                  # (S, D)
    v = v_ref[0].astype(cdt)                  # (S, D)

    # TODO(synk): when the query axis is tiled (n_q > 1) the K/V projections are
    # recomputed per query tile; precompute in a separate pass if that matters.
    Q = jnp.dot(q, wqkv[:, :D], preferred_element_type=jnp.float32) + bqkv[:, :D]
    K = jnp.dot(k, wqkv[:, D:2 * D], preferred_element_type=jnp.float32) + bqkv[:, D:2 * D]
    V = jnp.dot(v, wqkv[:, 2 * D:], preferred_element_type=jnp.float32) + bqkv[:, 2 * D:]

    _attention_core(Q, K, V, wo_ref, bo_ref, o_ref, h=h, d_k=d_k, compute_dtype=cdt)


def mha_kernel_fused(x_ref, wqkv_ref, bqkv_ref, wo_ref, bo_ref, o_ref, *, h, d_k):
    """Self-attention path (q is k is v, one query tile): single fused QKV matmul."""
    D = h * d_k
    cdt = wqkv_ref.dtype
    x = x_ref[0].astype(cdt)                                      # (S, D)
    qkv = jnp.dot(x, wqkv_ref[...],
                  preferred_element_type=jnp.float32) + bqkv_ref[...]   # (S, 3D) f32
    Q = qkv[:, :D]
    K = qkv[:, D:2 * D]
    V = qkv[:, 2 * D:]
    _attention_core(Q, K, V, wo_ref, bo_ref, o_ref, h=h, d_k=d_k, compute_dtype=cdt)


def _pick_q_tile(S, q_tile, target=256):
    if q_tile is not None:
        assert S % q_tile == 0 and (q_tile == S or q_tile % 8 == 0)
        return q_tile
    if S <= target:
        return S
    for t in range(target, 7, -8):            # multiples of 8, <= target
        if S % t == 0:
            return t
    return S


def _vmem_limit_bytes(tq, S, D, h, in_itemsize):
    weights = (3 * D * D + D * D) * 2 + 4 * D * 4            # bf16 W + f32 biases
    blocks = 2 * 2 * (2 * tq * D + 2 * S * D) * in_itemsize  # double-buffered q/out/k/v
    temps = (3 * S * D + 4 * tq * D) * 4                     # f32 Q/K/V + ctx/out temps
    scores = 3 * h * tq * S * 4                              # scores / e / p (f32)
    est = weights + blocks + temps + scores
    # Explicit budget with headroom; clamped so it stays <= physical VMEM on v7x (64 MiB).
    return int(min(max(2 * est, 32 * 1024 * 1024), 60 * 1024 * 1024))


def multi_headed_attention(q, k, v, params, *, h, q_tile=None):
    B, S, D = q.shape
    assert k.shape == (B, S, D) and v.shape == (B, S, D)
    assert D % h == 0
    d_k = D // h

    wqkv, bqkv = params["wqkv"], params["bqkv"]   # (D, 3D) bf16, (1, 3D) f32
    wo, bo = params["wo"], params["bo"]           # (D, D) bf16,  (1, D) f32
    assert wqkv.shape == (D, 3 * D) and wo.shape == (D, D)

    tq = _pick_q_tile(S, q_tile)
    n_q = S // tq
    self_attn = (q is k) and (k is v) and n_q == 1

    w_qkv_spec = pl.BlockSpec((D, 3 * D), lambda b, i: (0, 0))
    b_qkv_spec = pl.BlockSpec((1, 3 * D), lambda b, i: (0, 0))
    wo_spec = pl.BlockSpec((D, D), lambda b, i: (0, 0))
    bo_spec = pl.BlockSpec((1, D), lambda b, i: (0, 0))
    q_spec = pl.BlockSpec((1, tq, D), lambda b, i: (b, i, 0))
    kv_spec = pl.BlockSpec((1, S, D), lambda b, i: (b, 0, 0))
    out_spec = pl.BlockSpec((1, tq, D), lambda b, i: (b, i, 0))

    cost = pl.CostEstimate(
        flops=8 * B * S * D * D + 4 * B * S * S * D,
        transcendentals=B * h * S * S,
        bytes_accessed=4 * B * S * D * q.dtype.itemsize
        + wqkv.size * wqkv.dtype.itemsize + wo.size * wo.dtype.itemsize
        + (bqkv.size + bo.size) * 4,
    )

    compiler_params = pltpu.CompilerParams(
        dimension_semantics=("parallel", "parallel"),
        vmem_limit_bytes=_vmem_limit_bytes(tq, S, D, h, q.dtype.itemsize),
    )

    if self_attn:
        kernel = functools.partial(mha_kernel_fused, h=h, d_k=d_k)
        in_specs = [q_spec, w_qkv_spec, b_qkv_spec, wo_spec, bo_spec]
        args = (q, wqkv, bqkv, wo, bo)
    else:
        kernel = functools.partial(mha_kernel, h=h, d_k=d_k)
        in_specs = [q_spec, kv_spec, kv_spec, w_qkv_spec, b_qkv_spec, wo_spec, bo_spec]
        args = (q, k, v, wqkv, bqkv, wo, bo)

    return pl.pallas_call(
        kernel,
        out_shape=jax.ShapeDtypeStruct((B, S, D), q.dtype),
        grid=(B, n_q),
        in_specs=in_specs,
        out_specs=out_spec,
        compiler_params=compiler_params,
        cost_estimate=cost,
    )(*args)


# ----------------------------- parameters / reference -----------------------------

def init_params(key, d_model):
    # Deterministic synthetic init (shapes from nn.Linear(d_model, d_model) x4).
    keys = jax.random.split(key, 8)
    s = 1.0 / math.sqrt(d_model)

    def lin(kw, kb):
        w = jax.random.uniform(kw, (d_model, d_model), jnp.float32, -s, s)
        b = jax.random.uniform(kb, (1, d_model), jnp.float32, -s, s)
        return w, b

    wq, bq = lin(keys[0], keys[1])
    wk, bk = lin(keys[2], keys[3])
    wv, bv = lin(keys[4], keys[5])
    wo, bo = lin(keys[6], keys[7])
    return dict(wq=wq, bq=bq, wk=wk, bk=bk, wv=wv, bv=bv, wo=wo, bo=bo)


def pack_params(p, compute_dtype=jnp.bfloat16):
    """Pack Q/K/V weights into one (D, 3D) matrix; weights bf16, biases f32."""
    wqkv = jnp.concatenate([p["wq"], p["wk"], p["wv"]], axis=1).astype(compute_dtype)
    bqkv = jnp.concatenate([p["bq"], p["bk"], p["bv"]], axis=1).astype(jnp.float32)
    return dict(wqkv=wqkv, bqkv=bqkv,
                wo=p["wo"].astype(compute_dtype), bo=p["bo"].astype(jnp.float32))


def mha_reference(q, k, v, packed, *, h):
    """Pure-JAX f32 reference with exact torch semantics (mask=None, eval dropout)."""
    B, S, D = q.shape
    d_k = D // h
    wqkv = packed["wqkv"].astype(jnp.float32)
    bqkv = packed["bqkv"]
    wo = packed["wo"].astype(jnp.float32)
    bo = packed["bo"]
    wq, wk, wv = wqkv[:, :D], wqkv[:, D:2 * D], wqkv[:, 2 * D:]
    bq, bk, bv = bqkv[:, :D], bqkv[:, D:2 * D], bqkv[:, 2 * D:]

    def proj(x, w, b):
        return x @ w + b[0]

    Q = proj(q, wq, bq).reshape(B, S, h, d_k).transpose(0, 2, 1, 3)
    K = proj(k, wk, bk).reshape(B, S, h, d_k).transpose(0, 2, 1, 3)
    V = proj(v, wv, bv).reshape(B, S, h, d_k).transpose(0, 2, 1, 3)
    scores = jnp.einsum("bhqd,bhkd->bhqk", Q, K) / math.sqrt(d_k)
    p = jax.nn.softmax(scores, axis=-1)
    ctx = jnp.einsum("bhqk,bhkd->bhqd", p, V).transpose(0, 2, 1, 3).reshape(B, S, D)
    return proj(ctx, wo, bo)


if __name__ == "__main__":
    B, S, H, D_MODEL = 2, 8, 4, 32  # d_k = 8

    root = jax.random.PRNGKey(0)
    kq, kk, kv, kp = jax.random.split(root, 4)
    q = jax.random.normal(kq, (B, S, D_MODEL), jnp.float32)
    k = jax.random.normal(kk, (B, S, D_MODEL), jnp.float32)
    v = jax.random.normal(kv, (B, S, D_MODEL), jnp.float32)
    params = pack_params(init_params(kp, D_MODEL))

    # Cross-attention path (distinct q / k / v).
    out = jax.block_until_ready(multi_headed_attention(q, k, v, params, h=H))
    ref = mha_reference(q, k, v, params, h=H)
    assert out.shape == (B, S, D_MODEL)
    # bf16 MXU inputs + approx reciprocal => looser tolerance than the pure-f32 version.
    assert jnp.allclose(out, ref, atol=3e-2, rtol=3e-2), "cross-attn mismatch vs reference"

    # Self-attention path (fused QKV projection).
    out_sa = jax.block_until_ready(multi_headed_attention(q, q, q, params, h=H))
    ref_sa = mha_reference(q, q, q, params, h=H)
    assert jnp.allclose(out_sa, ref_sa, atol=3e-2, rtol=3e-2), "self-attn mismatch vs reference"

    print("KERNEL_OK")
</pallas_src>

<mosaic_0001>
module attributes {stable_mosaic.version = 11 : i64} {
  func.func @mha_kernel(%arg0: i32, %arg1: i32, %arg2: memref<1x8x32xf32, #tpu.memory_space<vmem>>, %arg3: memref<1x8x32xf32, #tpu.memory_space<vmem>>, %arg4: memref<1x8x32xf32, #tpu.memory_space<vmem>>, %arg5: memref<32x96xbf16, #tpu.memory_space<vmem>>, %arg6: memref<1x96xf32, #tpu.memory_space<vmem>>, %arg7: memref<32x32xbf16, #tpu.memory_space<vmem>>, %arg8: memref<1x32xf32, #tpu.memory_space<vmem>>, %arg9: memref<1x8x32xf32, #tpu.memory_space<vmem>>) attributes {dimension_semantics = [#tpu.dimension_semantics<parallel>, #tpu.dimension_semantics<parallel>], iteration_bounds = array<i64: 2, 1>, scalar_prefetch = 0 : i64, scratch_operands = 0 : i64, tpu.core_type = #tpu.core_type<tc>, window_params = [{transform_indices = @transform_0, window_bounds = array<i64: 1, 8, 32>}, {transform_indices = @transform_1, window_bounds = array<i64: 1, 8, 32>}, {transform_indices = @transform_2, window_bounds = array<i64: 1, 8, 32>}, {pipeline_mode = #tpu.pipeline_mode<synchronous>, transform_indices = @transform_3, window_bounds = array<i64: 32, 96>}, {pipeline_mode = #tpu.pipeline_mode<synchronous>, transform_indices = @transform_4, window_bounds = array<i64: 1, 96>}, {pipeline_mode = #tpu.pipeline_mode<synchronous>, transform_indices = @transform_5, window_bounds = array<i64: 32, 32>}, {pipeline_mode = #tpu.pipeline_mode<synchronous>, transform_indices = @transform_6, window_bounds = array<i64: 1, 32>}, {transform_indices = @transform_7, window_bounds = array<i64: 1, 8, 32>}]} {
    %c0 = arith.constant 0 : index
    %c0_0 = arith.constant 0 : index
    %0 = vector.load %arg5[%c0, %c0_0] : memref<32x96xbf16, #tpu.memory_space<vmem>>, vector<32x96xbf16>
    %c0_1 = arith.constant 0 : index
    %c0_2 = arith.constant 0 : index
    %1 = vector.load %arg6[%c0_1, %c0_2] : memref<1x96xf32, #tpu.memory_space<vmem>>, vector<1x96xf32>
    %c0_3 = arith.constant 0 : index
    %c0_4 = arith.constant 0 : index
    %c0_5 = arith.constant 0 : index
    %2 = vector.load %arg2[%c0_3, %c0_4, %c0_5] : memref<1x8x32xf32, #tpu.memory_space<vmem>>, vector<1x8x32xf32>
    %3 = vector.shape_cast %2 : vector<1x8x32xf32> to vector<8x32xf32>
    %4 = arith.truncf %3 : vector<8x32xf32> to vector<8x32xbf16>
    %c0_6 = arith.constant 0 : index
    %c0_7 = arith.constant 0 : index
    %c0_8 = arith.constant 0 : index
    %5 = vector.load %arg3[%c0_6, %c0_7, %c0_8] : memref<1x8x32xf32, #tpu.memory_space<vmem>>, vector<1x8x32xf32>
    %6 = vector.shape_cast %5 : vector<1x8x32xf32> to vector<8x32xf32>
    %7 = arith.truncf %6 : vector<8x32xf32> to vector<8x32xbf16>
    %c0_9 = arith.constant 0 : index
    %c0_10 = arith.constant 0 : index
    %c0_11 = arith.constant 0 : index
    %8 = vector.load %arg4[%c0_9, %c0_10, %c0_11] : memref<1x8x32xf32, #tpu.memory_space<vmem>>, vector<1x8x32xf32>
    %9 = vector.shape_cast %8 : vector<1x8x32xf32> to vector<8x32xf32>
    %10 = arith.truncf %9 : vector<8x32xf32> to vector<8x32xbf16>
    %11 = vector.extract_strided_slice %0 {offsets = [0, 0], sizes = [32, 32], strides = [1, 1]} : vector<32x96xbf16> to vector<32x32xbf16>
    %cst = arith.constant dense<0.000000e+00> : vector<8x32xf32>
    %12 = tpu.matmul %4, %11, %cst {dimension_numbers = #tpu.dot_dimension_numbers<[1], [0], [0], [1], [0, 0, 1, 1], [], []>} : vector<8x32xbf16>, vector<32x32xbf16>, vector<8x32xf32> -> vector<8x32xf32>
    %13 = vector.extract_strided_slice %1 {offsets = [0, 0], sizes = [1, 32], strides = [1, 1]} : vector<1x96xf32> to vector<1x32xf32>
    %14 = vector.broadcast %13 : vector<1x32xf32> to vector<8x32xf32>
    %15 = arith.addf %12, %14 : vector<8x32xf32>
    %16 = vector.extract_strided_slice %0 {offsets = [0, 32], sizes = [32, 32], strides = [1, 1]} : vector<32x96xbf16> to vector<32x32xbf16>
    %cst_12 = arith.constant dense<0.000000e+00> : vector<8x32xf32>
    %17 = tpu.matmul %7, %16, %cst_12 {dimension_numbers = #tpu.dot_dimension_numbers<[1], [0], [0], [1], [0, 0, 1, 1], [], []>} : vector<8x32xbf16>, vector<32x32xbf16>, vector<8x32xf32> -> vector<8x32xf32>
    %18 = vector.extract_strided_slice %1 {offsets = [0, 32], sizes = [1, 32], strides = [1, 1]} : vector<1x96xf32> to vector<1x32xf32>
    %19 = vector.broadcast %18 : vector<1x32xf32> to vector<8x32xf32>
    %20 = arith.addf %17, %19 : vector<8x32xf32>
    %21 = vector.extract_strided_slice %0 {offsets = [0, 64], sizes = [32, 32], strides = [1, 1]} : vector<32x96xbf16> to vector<32x32xbf16>
    %cst_13 = arith.constant dense<0.000000e+00> : vector<8x32xf32>
    %22 = tpu.matmul %10, %21, %cst_13 {dimension_numbers = #tpu.dot_dimension_numbers<[1], [0], [0], [1], [0, 0, 1, 1], [], []>} : vector<8x32xbf16>, vector<32x32xbf16>, vector<8x32xf32> -> vector<8x32xf32>
    %23 = vector.extract_strided_slice %1 {offsets = [0, 64], sizes = [1, 32], strides = [1, 1]} : vector<1x96xf32> to vector<1x32xf32>
    %24 = vector.broadcast %23 : vector<1x32xf32> to vector<8x32xf32>
    %25 = arith.addf %22, %24 : vector<8x32xf32>
    %cst_14 = arith.constant 0.353553385 : f32
    %26 = vector.broadcast %cst_14 : f32 to vector<8x32xf32>
    %27 = arith.mulf %15, %26 : vector<8x32xf32>
    %28 = arith.truncf %27 : vector<8x32xf32> to vector<8x32xbf16>
    %29 = vector.shape_cast %28 : vector<8x32xbf16> to vector<8x4x8xbf16>
    %30 = arith.truncf %20 : vector<8x32xf32> to vector<8x32xbf16>
    %31 = vector.shape_cast %30 : vector<8x32xbf16> to vector<8x4x8xbf16>
    %32 = arith.truncf %25 : vector<8x32xf32> to vector<8x32xbf16>
    %33 = vector.shape_cast %32 : vector<8x32xbf16> to vector<8x4x8xbf16>
    %34 = tpu.transpose %29, [1, 0, 2] : vector<8x4x8xbf16> -> vector<4x8x8xbf16>
    %35 = tpu.transpose %31, [1, 0, 2] : vector<8x4x8xbf16> -> vector<4x8x8xbf16>
    %36 = tpu.transpose %33, [1, 0, 2] : vector<8x4x8xbf16> -> vector<4x8x8xbf16>
    "tpu.trace_start"() <{level = 10 : i32, message = "hqd,hkd->hqk"}> : () -> ()
    %cst_15 = arith.constant dense<0.000000e+00> : vector<4x8x8xf32>
    %37 = tpu.matmul %34, %35, %cst_15 {dimension_numbers = #tpu.dot_dimension_numbers<[2], [2], [1], [1], [0, 0, 0, 1, 1, 1], [0], [0]>} : vector<4x8x8xbf16>, vector<4x8x8xbf16>, vector<4x8x8xf32> -> vector<4x8x8xf32>
    "tpu.trace_stop"() : () -> ()
    %cst_16 = arith.constant dense<0xFF800000> : vector<4x8xf32>
    %38 = vector.multi_reduction <maximumf>, %37, %cst_16 [2] : vector<4x8x8xf32> to vector<4x8xf32>
    %39 = vector.shape_cast %38 : vector<4x8xf32> to vector<4x8x1xf32>
    %40 = vector.broadcast %39 : vector<4x8x1xf32> to vector<4x8x8xf32>
    %41 = arith.subf %37, %40 : vector<4x8x8xf32>
    %42 = math.exp %41 : vector<4x8x8xf32>
    %cst_17 = arith.constant dense<0.000000e+00> : vector<4x8xf32>
    %43 = vector.multi_reduction <add>, %42, %cst_17 [2] : vector<4x8x8xf32> to vector<4x8xf32>
    %44 = vector.shape_cast %43 : vector<4x8xf32> to vector<4x8x1xf32>
    %45 = tpu.reciprocal %44 {approx = true} : vector<4x8x1xf32> -> vector<4x8x1xf32>
    %46 = vector.broadcast %45 : vector<4x8x1xf32> to vector<4x8x8xf32>
    %47 = arith.mulf %42, %46 : vector<4x8x8xf32>
    %48 = arith.truncf %47 : vector<4x8x8xf32> to vector<4x8x8xbf16>
    "tpu.trace_start"() <{level = 10 : i32, message = "hqk,hkd->hqd"}> : () -> ()
    %cst_18 = arith.constant dense<0.000000e+00> : vector<4x8x8xf32>
    %49 = tpu.matmul %48, %36, %cst_18 {dimension_numbers = #tpu.dot_dimension_numbers<[2], [1], [1], [2], [0, 0, 0, 1, 1, 2], [0], [0]>} : vector<4x8x8xbf16>, vector<4x8x8xbf16>, vector<4x8x8xf32> -> vector<4x8x8xf32>
    "tpu.trace_stop"() : () -> ()
    %50 = tpu.transpose %49, [1, 0, 2] : vector<4x8x8xf32> -> vector<8x4x8xf32>
    %51 = vector.shape_cast %50 : vector<8x4x8xf32> to vector<8x32xf32>
    %52 = arith.truncf %51 : vector<8x32xf32> to vector<8x32xbf16>
    %c0_19 = arith.constant 0 : index
    %c0_20 = arith.constant 0 : index
    %53 = vector.load %arg7[%c0_19, %c0_20] : memref<32x32xbf16, #tpu.memory_space<vmem>>, vector<32x32xbf16>
    %cst_21 = arith.constant dense<0.000000e+00> : vector<8x32xf32>
    %54 = tpu.matmul %52, %53, %cst_21 {dimension_numbers = #tpu.dot_dimension_numbers<[1], [0], [0], [1], [0, 0, 1, 1], [], []>} : vector<8x32xbf16>, vector<32x32xbf16>, vector<8x32xf32> -> vector<8x32xf32>
    %c0_22 = arith.constant 0 : index
    %c0_23 = arith.constant 0 : index
    %55 = vector.load %arg8[%c0_22, %c0_23] : memref<1x32xf32, #tpu.memory_space<vmem>>, vector<1x32xf32>
    %56 = vector.broadcast %55 : vector<1x32xf32> to vector<8x32xf32>
    %57 = arith.addf %54, %56 : vector<8x32xf32>
    %c0_24 = arith.constant 0 : index
    %c0_25 = arith.constant 0 : index
    %c0_26 = arith.constant 0 : index
    %58 = vector.load %arg9[%c0_24, %c0_25, %c0_26] : memref<1x8x32xf32, #tpu.memory_space<vmem>>, vector<1x8x32xf32>
    %59 = vector.shape_cast %58 : vector<1x8x32xf32> to vector<8x32xf32>
    %60 = vector.shape_cast %57 : vector<8x32xf32> to vector<1x8x32xf32>
    tpu.vector_store %arg9[%c0_24, %c0_25, %c0_26], %60 {strides = array<i32>} : memref<1x8x32xf32, #tpu.memory_space<vmem>>, vector<1x8x32xf32>,
    return
  }
  func.func @transform_0(%arg0: i32, %arg1: i32) -> (i32, i32, i32) {
    %c0_i32 = arith.constant 0 : i32
    %c0_i32_0 = arith.constant 0 : i32
    return %arg0, %arg1, %c0_i32 : i32, i32, i32
  }
  func.func @transform_1(%arg0: i32, %arg1: i32) -> (i32, i32, i32) {
    %c0_i32 = arith.constant 0 : i32
    %c0_i32_0 = arith.constant 0 : i32
    %c0_i32_1 = arith.constant 0 : i32
    return %arg0, %c0_i32, %c0_i32_0 : i32, i32, i32
  }
  func.func @transform_2(%arg0: i32, %arg1: i32) -> (i32, i32, i32) {
    %c0_i32 = arith.constant 0 : i32
    %c0_i32_0 = arith.constant 0 : i32
    %c0_i32_1 = arith.constant 0 : i32
    return %arg0, %c0_i32, %c0_i32_0 : i32, i32, i32
  }
  func.func @transform_3(%arg0: i32, %arg1: i32) -> (i32, i32) {
    %c0_i32 = arith.constant 0 : i32
    %c0_i32_0 = arith.constant 0 : i32
    %c0_i32_1 = arith.constant 0 : i32
    return %c0_i32, %c0_i32_0 : i32, i32
  }
  func.func @transform_4(%arg0: i32, %arg1: i32) -> (i32, i32) {
    %c0_i32 = arith.constant 0 : i32
    %c0_i32_0 = arith.constant 0 : i32
    %c0_i32_1 = arith.constant 0 : i32
    return %c0_i32, %c0_i32_0 : i32, i32
  }
  func.func @transform_5(%arg0: i32, %arg1: i32) -> (i32, i32) {
    %c0_i32 = arith.constant 0 : i32
    %c0_i32_0 = arith.constant 0 : i32
    %c0_i32_1 = arith.constant 0 : i32
    return %c0_i32, %c0_i32_0 : i32, i32
  }
  func.func @transform_6(%arg0: i32, %arg1: i32) -> (i32, i32) {
    %c0_i32 = arith.constant 0 : i32
    %c0_i32_0 = arith.constant 0 : i32
    %c0_i32_1 = arith.constant 0 : i32
    return %c0_i32, %c0_i32_0 : i32, i32
  }
  func.func @transform_7(%arg0: i32, %arg1: i32) -> (i32, i32, i32) {
    %c0_i32 = arith.constant 0 : i32
    %c0_i32_0 = arith.constant 0 : i32
    return %arg0, %arg1, %c0_i32 : i32, i32, i32
  }
}

</mosaic_0001>

<bundles_post_ra>
// kernel: tpu_custom_call.1
= control target key start
LH: loop header
LB: loop body
LE: loop exit
PB: predicated region body
PF: predicated region fallthrough
CT: control target
= control target key end

     0   :  { %s2890_s0 = inlined_call_operand.hbm [shape: f32[2,8,32], index: 0, kind: input, shape index: {}]   ;;  %s2891_s1 = inlined_call_operand.hbm [shape: f32[2,8,32], index: 1, kind: input, shape index: {}]   ;;  %s2892_s2 = inlined_call_operand.hbm [shape: f32[2,8,32], index: 2, kind: input, shape index: {}]   ;;  %s2893_s3 = inlined_call_operand.hbm [shape: bf16[32,96], index: 3, kind: input, shape index: {}]   ;;  %s2894_s4 = inlined_call_operand.vmem [shape: f32[1,96], index: 4, kind: input, shape index: {}]   ;;  %s2895_s5 = inlined_call_operand.hbm [shape: bf16[32,32], index: 5, kind: input, shape index: {}]   ;;  %s2896_s6 = inlined_call_operand.vmem [shape: f32[1,32], index: 6, kind: input, shape index: {}]   ;;  %s2897_s7 = inlined_call_operand.hbm [shape: f32[2,8,32], index: 7, kind: output, shape index: {}]  }
   0x1   :  { %2914 = sst [smem:[#allocation22_spill]] %s2891_s1 }
   0x2   :  { %2915 = sst [smem:[#allocation23_spill]] %s2893_s3 }
   0x3   :  { %2916 = sst [smem:[#allocation24_spill]] %s2897_s7 }
   0x4   :  { %12 = vsyncpa [#allocation3], 0 }
   0x5   :  { %14 = vsyncpa [#allocation3 + $0x1], 0 }
   0x6   :  { %15 = vsyncpa [#allocation6], 0 }
   0x7   :  { %17 = vsyncpa [#allocation6 + $0x1], 0 }
   0x8   :  { %18 = vsyncpa [#allocation9], 0 }
   0x9   :  { %19 = vsyncpa [#allocation4], 0 }
   0xa   :  { %21 = vsyncpa [#allocation4 + $0x1], 0  ;;  %s2459_s24 = smov 0   ;;  %s2461_s25 = smov 0  }
   0xb   :  { %s2463_s26 = smov 0   ;;  %s2465_s27 = smov 0  }
   0xc   :  { %s2467_s28 = smov 0   ;;  %s2469_s29 = smov 0  }
   0xd LB: > { %2917 = sst [smem:[#allocation16_spill]] %s2376_s24  ;;  %s2490_s30 = sadd.s32 4294967295, %s2396_s29   ;;  %s2396_s29 = sphi %s2469_s29, %s27_s29   ;;  %s2392_s28 = sphi %s2467_s28, %s2951_s28   ;;  %s2388_s27 = sphi %s2465_s27, %s2950_s27   ;;  %s2384_s26 = sphi %s2463_s26, %s2954_s26   ;;  %s2380_s25 = sphi %s2461_s25, %s2953_s25   ;;  %s2376_s24 = sphi %s2459_s24, %s2952_s24  }
   0xe   : > { %2918 = sst [smem:[#allocation17_spill]] %s2392_s28  ;;  %s1894_s8 = sadd.s32 4294967294, %s2396_s29  }
   0xf   : > { %2919 = sst [smem:[#allocation18_spill]] %s2396_s29  ;;  %p61_p0 = scmp.ne.s32.totalorder %s2380_s25, %s2376_s24 }
  0x10   : > { %p2906_p1 = scmp.eq.s32.totalorder %s2490_s30, 0  ;;  %p229_p3 = scmp.eq.s32.totalorder %s1894_s8, 1 }
  0x11   : > { %p1895_p5 = scmp.ge.s32.totalorder %s2396_s29, 1  ;;  %p236_p7 = scmp.lt.s32.totalorder %s2396_s29, 3 }
  0x12   : > { %p2499_p4 = por %p2906_p1, %p61_p0  ;;  %p2504_p6 = por %p229_p3, %p61_p0 }
  0x13   : > { %p2509_p8 = pnand %p1895_p5, %p236_p7  ;;  %s2398_s12 = smov [#allocation8]  }
  0x14   : > { %s2920_s9 = scalar_select %p2499_p4, 1, 0 }
  0x15   : > { %s2921_s10 = scalar_select %p2504_p6, 1, 0 }
  0x16   : > { %s2923_s11 = scalar_select %p2509_p8, 1, 0 }
  0x17   : > { %2922 = sst [smem:[#allocation19_spill]] %s2921_s10  ;;  %s248_s13 = sshll.u32 %s2398_s12, 4  ;;  %s249_s13 = int_to_ptr.vmem [resolvable:$true] %s248_s13 }
  0x18   : > { %p2060_p9 = pneg %p2509_p8  ;;  %s39_s15 = sadd.s32 1, %s2392_s28 }
  0x19   : > { %s2183_s16 = scalar_lea.vmem %s249_s13, 256  ;;  %p2191_p5 = scmp.lt.s32.totalorder %s249_s13, %s249_s13 }
  0x1a   : > { %p2518_p11 = pnand %p2060_p9, %p2906_p1  ;;  %p2184_p13 = scmp.ne.s32.totalorder %s249_s13, %s2183_s16 }
  0x1b   : > { %p2192_p7 = scmp.lt.s32.totalorder %s2183_s16, %s2183_s16 }
  0x1c   : > { %p2907_p12 = pneg %p2518_p11 }
  0x1d   : > { %p2193_p2 = por %p2192_p7, %p2191_p5 }
  0x1e   : > { %p2186_p0 = pnand %p2184_p13, %p2907_p12 }
  0x20   : > { %p2187_p3 = pneg %p2186_p0 }
  0x22   : > { %p2194_p10 = pnand %p2193_p2, %p2187_p3 }
  0x24   : > { %2197 = shalt.err (!%p2194_p10)
}
  0x25   : > { %s2898_s17 = smov 64   ;;  %s2899_s18 = smov 4  }
  0x26   : > { %s2925_s3 = sld [smem:[#allocation23_spill]]  ;;  %p41_p2 = scmp.ge.s32.totalorder %s39_s15, 2 }
  0x27   : > { %s48_s21 = sadd.s32 1, %s2384_s26  ;;  %p55_p9 = scmp.ne.s32.totalorder %s2384_s26, %s2380_s25 }
  0x28   : > { %p56_p10 = scmp.eq.s32.totalorder %s2396_s29, 0  ;;  %s2956_s15 = smov (%p41_p2, %s39_s15), 0 }
  0x29   : > { %2926 = sst [smem:[#allocation20_spill]] %s2956_s15  ;;  %p2927_p0 = scmp.eq.s32.totalorder %s2490_s30, 1 }
  0x2a   : > { %p57_p13 = por %p56_p10, %p55_p9  ;;  %s43_s23 = ssub.s32 %s2392_s28, %s2956_s15 }
  0x2b   : > { %p2544_p3 = por %p2927_p0, %p55_p9  ;;  %p2083_p5 = scmp.lt.s32.totalorder %s2396_s29, 2 }
  0x2c   : > { %2063 = dma.hbm_to_vmem [thread:$0]  (!%p2518_p11), %s2925_s3, 256, %s249_s13, [#allocation9], %s2898_s17, %s2898_s17, %s2899_s18  }
  0x2d   : > { %s2928_s22 = scalar_select %p2544_p3, 1, 0 }
  0x2e   : > { %p46_p7 = scmp.eq.s32.totalorder %s43_s23, 0  ;;  %s2900_s8 = sand.u32 1, %s2384_s26  }
  0x2f   : > { %s2554_s12 = sshll.u32 %s2900_s8, 3  ;;  %s2557_s13 = sshll.u32 %s2392_s28, 7 }
  0x30   : > { %s2560_s16 = scalar_select %p46_p7, %s2384_s26, %s48_s21  }
  0x31   : > { %p2562_p2 = pnand %p2083_p5, %p57_p13  ;;  %s300_s20 = sand.u32 1, %s2396_s29  }
  0x32   : > { %2929 = sst [smem:[#allocation21_spill]] %s2560_s16  ;;  %s304_s3 = scalar_lea.vmem [#allocation5], %s2554_s12 }
  0x33   : > { %s2931_s1 = sld [smem:[#allocation22_spill]]  ;;  %s311_s8 = sshll.u32 %s304_s3, 4  ;;  %s312_s8 = int_to_ptr.vmem [resolvable:$true] %s311_s8 }
  0x34   : > { %s2401_s15 = smov [#allocation10]   ;;  %s2572_s10 = scalar_lea.sflag [#allocation6], %s300_s20 }
  0x35   : > { %s264_s28 = sshll.u32 %s2401_s15, 4  ;;  %p2908_p9 = pneg %p2562_p2  ;;  %s265_s28 = int_to_ptr.vmem [resolvable:$true] %s264_s28 }
  0x36   : > { %s2211_s21 = scalar_lea.vmem %s312_s8, 128  ;;  %s2402_s16 = smov [#allocation5]  }
  0x37   : > { %p2212_p10 = scmp.ne.s32.totalorder %s312_s8, %s2211_s21  ;;  %s2216_s29 = sshll.u32 %s2402_s16, 4  ;;  %s2217_s29 = int_to_ptr.vmem [resolvable:$false] %s2216_s29 }
  0x38   : > { %s2218_s17 = scalar_lea.vmem %s2217_s29, 256  ;;  %p2219_p5 = scmp.lt.s32.totalorder %s312_s8, %s2217_s29 }
  0x39   : > { %s309_s23 = scalar_lea.hbm %s2931_s1, %s2557_s13  ;;  %p2214_p13 = pnand %p2212_p10, %p2908_p9 }
  0x3a   : > { %p2220_p7 = scmp.lt.s32.totalorder %s2218_s17, %s2211_s21 }
  0x3b   : > { %p2215_p0 = pneg %p2214_p13 }
  0x3c   : > { %p2221_p1 = por %p2220_p7, %p2219_p5 }
  0x3e   : > { %p2222_p12 = pnand %p2221_p1, %p2215_p0 }
  0x40   : > { %2225 = shalt.err (!%p2222_p12)
}
  0x41   : > { %2073 = dma.hbm_to_vmem [thread:$0]  (!%p2562_p2), %s309_s23, 128, %s312_s8, %s2572_s10  }
  0x42   : > { %s2237_s3 = scalar_lea.vmem %s265_s28, 256  ;;  %p2932_p10 = pneg %p2518_p11 }
  0x43   : > { %p2238_p6 = scmp.ne.s32.totalorder %s265_s28, %s2237_s3  ;;  %p2245_p3 = scmp.lt.s32.totalorder %s265_s28, %s265_s28 }
  0x44   : > { %p2246_p4 = scmp.lt.s32.totalorder %s2237_s3, %s2237_s3 }
  0x45   : > { %p2240_p13 = pnand %p2238_p6, %p2932_p10 }
  0x46   : > { %p2247_p8 = por %p2246_p4, %p2245_p3 }
  0x47   : > { %p2241_p9 = pneg %p2240_p13 }
  0x49   : > { %p2248_p5 = pnand %p2247_p8, %p2241_p9 }
  0x4b   : > { %2251 = shalt.err (!%p2248_p5)
}
  0x4c   : > { %s2933_s29 = smov 4   ;;  %s2934_s15 = smov 64  }
  0x4d   : > { %2066 = dma.hbm_to_vmem [thread:$0]  (!%p2518_p11), %s2895_s5, 256, %s265_s28, [#allocation9], %s2934_s15, %s2934_s15, %s2933_s29  }
  0x4e   : > { %s291_s23 = scalar_lea.hbm %s2890_s0, %s2557_s13  ;;  %s285_s21 = scalar_lea.vmem [#allocation2], %s2554_s12 }
  0x4f   : > { %s293_s17 = sshll.u32 %s285_s21, 4  ;;  %s327_s1 = scalar_lea.hbm %s2892_s2, %s2557_s13  ;;  %s294_s17 = int_to_ptr.vmem [resolvable:$true] %s293_s17 }
  0x50   : > { %s2935_s24 = sand.u32 1, %s2384_s26   ;;  %s2265_s18 = scalar_lea.vmem %s294_s17, 128 }
  0x51   : > { %s282_s7 = scalar_lea.sflag [#allocation3], %s2935_s24  ;;  %p2266_p1 = scmp.ne.s32.totalorder %s294_s17, %s2265_s18 }
  0x52   : > { %p2936_p4 = pneg %p2562_p2  ;;  %s2403_s28 = smov [#allocation2]  }
  0x53   : > { %s2270_s29 = sshll.u32 %s2403_s28, 4  ;;  %s2271_s29 = int_to_ptr.vmem [resolvable:$false] %s2270_s29 }
  0x54   : > { %p2268_p6 = pnand %p2266_p1, %p2936_p4  ;;  %s2272_s15 = scalar_lea.vmem %s2271_s29, 256 }
  0x55   : > { %p2273_p11 = scmp.lt.s32.totalorder %s294_s17, %s2271_s29  ;;  %p2274_p12 = scmp.lt.s32.totalorder %s2272_s15, %s2265_s18 }
  0x56   : > { %p2269_p8 = pneg %p2268_p6 }
  0x57   : > { %p2275_p3 = por %p2274_p12, %p2273_p11 }
  0x59   : > { %p2276_p9 = pnand %p2275_p3, %p2269_p8 }
  0x5b   : > { %2279 = shalt.err (!%p2276_p9)
}
  0x5c   : > { %2070 = dma.hbm_to_vmem [thread:$0]  (!%p2562_p2), %s291_s23, 128, %s294_s17, %s282_s7  }
  0x5d   : > { %s322_s24 = scalar_lea.vmem [#allocation7], %s2554_s12  ;;  %p2937_p7 = pmov %p2936_p4 }
  0x5e   : > { %s329_s16 = sshll.u32 %s322_s24, 4  ;;  %s2404_s20 = smov [#allocation7]   ;;  %s330_s16 = int_to_ptr.vmem [resolvable:$true] %s329_s16 }
  0x5f   : > { %s2293_s8 = scalar_lea.vmem %s330_s16, 128  ;;  %s2298_s21 = sshll.u32 %s2404_s20, 4  ;;  %s2299_s21 = int_to_ptr.vmem [resolvable:$false] %s2298_s21 }
  0x60   : > { %p2294_p0 = scmp.ne.s32.totalorder %s330_s16, %s2293_s8  ;;  %s2300_s14 = scalar_lea.vmem %s2299_s21, 256 }
  0x61   : > { %p2301_p5 = scmp.lt.s32.totalorder %s330_s16, %s2299_s21  ;;  %p2302_p1 = scmp.lt.s32.totalorder %s2300_s14, %s2293_s8 }
  0x62   : > { %p2296_p10 = pnand %p2294_p0, %p2937_p7 }
  0x63   : > { %p2303_p4 = por %p2302_p1, %p2301_p5 }
  0x64   : > { %p2297_p13 = pneg %p2296_p10 }
  0x66   : > { %p2304_p6 = pnand %p2303_p4, %p2297_p13 }
  0x68   : > { %2307 = shalt.err (!%p2304_p6)
}
  0x69   : > { %2076 = dma.hbm_to_vmem [thread:$0]  (!%p2562_p2), %s327_s1, 128, %s330_s16, %s2572_s10  }
  0x6a   : > { %p2938_p8 = scmp.ne.s32.totalorder %s2923_s11, 0 }
  0x6b   : > { %s2624_s23 = sand.u32 (!%p2938_p8), 1, %s2380_s25   ;;  %p2939_p11 = scmp.ne.s32.totalorder (!%p2938_p8), %s2920_s9, 0 }
  0x6c   : > { %338 = sbr.rel (%p2938_p8) target bundleno = 1700 (0x6a4), region = 48  ;;  %s2627_s17 = sshll.u32 (!%p2938_p8), %s2624_s23, 3 }
  0x6d   : > { %s341_s19 = scalar_lea.sflag (!%p2938_p8), [#allocation3], %s2624_s23  ;;  %s344_s3 = scalar_lea.vmem (!%p2938_p8), [#allocation2], %s2627_s17 }
  0x71   : > { %2359 = dma.done.wait (%p2939_p11), %s341_s19, 128  }
  0x72   : > { %2361 = vsyncadd (%p2939_p11), %s341_s19, 4294967168  ;;  %s349_s1 = sand.u32 1, %s2490_s30   ;;  %s353_s11 = scalar_lea.vmem [#allocation5], %s2627_s17 }
  0x73   : > { %s350_s10 = scalar_lea.sflag [#allocation6], %s349_s1 }
  0x74   : > { %2363 = dma.done.wait (%p2939_p11), %s350_s10, 256  }
  0x75   : > { %2365 = vsyncadd (%p2939_p11), %s350_s10, 4294967040  ;;  %s362_s13 = scalar_lea.vmem [#allocation7], %s2627_s17  ;;  %p2940_p2 = scmp.eq.s32.totalorder %s2490_s30, 0 }
  0x77   : > { %2367 = dma.done.wait (%p2940_p2), [#allocation9], 512   ;;  %p2941_p12 = pmov %p2940_p2 }
  0x78   : > { %v2405_v0 = vmov 0.0   ;;  %vm2406_vm0 = vmmov 0   ;;  %v2152_v1 = vld [vmem:[#allocation8 + $0x8] sm:$0xff]   ;;  %s2407_s9 = smov 96   ;;  %v2153_v2 = vld [vmem:[#allocation8] sm:$0xff]   ;;  %v417_v3 = vld [vmem:[%s344_s3] sm:$0xff]  ;;  %v601_v26 = vlaneseq }
  0x79   : > { %2369 = vsyncadd (%p2941_p12), [#allocation9], 4294966784  ;;  %1972 = vmatprep.subr.bf16.mxu1 %v2405_v0  ;;  %1964 = vmatprep.subr.bf16.mxu0 %v2405_v0  ;;  %v2655_v4 = vld [vmem:[%s2894_s4] ss:$0 sm:$0xff]  ;;  %v418_v5 = vpack.c.bf16 %v417_v3, %v417_v3  ;;  %vm441_vm1 = vcmask 261120   ;;  %v419_v7 = vld [vmem:[%s353_s11] sm:$0xff] }
  0x7a   : > { %1976 = vmatprep.mubr.msk.bf16.mxu1 %vm2406_vm0, %v2405_v0  ;;  %1968 = vmatprep.mubr.msk.bf16.mxu0 %vm2406_vm0, %v2405_v0  ;;  %v420_v9 = vpack.c.bf16 %v419_v7, %v419_v7  ;;  %s2408_s28 = smov 112   ;;  %s2409_s29 = smov 120   ;;  %v2412_v24 = vmov 1983009808   ;;  %v602_v28 = vshrl.u32 %v601_v26, 7  ;;  %v2414_v46 = vmov 0  }
  0x7b   : > { %487 = vrot.lane.b32.xlu0 %v2152_v1, %s2407_s9  ;;  %1965 = vmatpush3.bf16.msra.mxu0 %v2152_v1  ;;  %s2410_s15 = smov 104   ;;  %s2411_s24 = smov 64   ;;  %v599_v25 = vunpack.c.l.s4 %v2412_v24  ;;  %v2413_v29 = vmov 1934713408   ;;  %vm1097_vm2 = vcmask 64512   ;;  %vm1333_vm3 = vcmask 1043456  }
  0x7c   : > { %1966 = vmatprep.subr.bf16.mxu0 %v2405_v0  ;;  %491 = vrot.lane.b32.xlu1 %v2655_v4, %s2407_s9  ;;  %v616_v30 = vunpack.c.l.s4 %v2413_v29  ;;  %s2415_s16 = smov 16   ;;  %s2416_s8 = smov 8   ;;  %vm1664_vm4 = vcmask 130048   ;;  %vm1666_vm5 = vcmask 195584  }
  0x7d   : > { %v600_v27 = vunpack.c.0.s8 %v599_v25  ;;  %s2417_s20 = smov 24   ;;  %s1933_s7 = sshll.u32 %s2388_s27, 7 }
  0x7e   : > { %v617_v32 = vunpack.c.0.s8 %v616_v30  ;;  %s410_s12 = scalar_lea.vmem [#allocation11], %s2627_s17  ;;  %s2942_s10 = sld [smem:[#allocation24_spill]] }
  0x7f   : > { %485 = vrot.lane.b32.xlu0 %v2153_v2, %s2407_s9  ;;  %1967 = vmatpush3.bf16.msra.mxu0 %v2153_v2  ;;  %v2677_v31 = vsub.s32 %v600_v27, %v602_v28  ;;  %s1751_s19 = sshll.u32 %s410_s12, 4  ;;  %p2943_p9 = scmp.ne.s32.totalorder %s2928_s22, 0  ;;  %s2843_s19 = int_to_ptr.vmem [resolvable:$true] %s1751_s19 }
  0x80   : > { %1980 = vmatprep.subr.bf16.mxu0 %v2405_v0  ;;  %v2679_v35 = vsub.s32 %v617_v32, %v602_v28  ;;  %s2308_s27 = scalar_lea.vmem %s2843_s19, 128  ;;  %s2418_s17 = smov [#allocation11]  }
  0x81   : > { %p2309_p3 = scmp.ne.s32.totalorder %s2843_s19, %s2308_s27  ;;  %s2312_s9 = sshll.u32 %s2418_s17, 4  ;;  %s2313_s9 = int_to_ptr.vmem [resolvable:$false] %s2312_s9 }
  0x82   : > { %1969 = vmatmul.mubr.msk.bf16.vlgmr.msra.gmra.mxu0 %vm441_vm1, %v418_v5  ;;  %s2314_s30 = scalar_lea.vmem %s2313_s9, 256  ;;  %p2315_p10 = scmp.lt.s32.totalorder %s2843_s19, %s2313_s9 }
  0x83   : > { %1984 = vmatprep.mubr.msk.bf16.mxu0 %vm2406_vm0, %v2405_v0  ;;  %p2310_p0 = pnand %p2309_p3, %p2943_p9  ;;  %p2316_p13 = scmp.lt.s32.totalorder %s2314_s30, %s2308_s27 }
  0x84   : > { %s2841_s11 = scalar_lea.hbm %s2942_s10, %s1933_s7 }
  0x85   : > { %p2311_p7 = pneg %p2310_p0  ;;  %p2317_p5 = por %p2316_p13, %p2315_p10 }
  0x87   : > { %p2318_p1 = pnand %p2317_p5, %p2311_p7 }
  0xed   : > { %v488_v6 = vpop.permute.xlu0 %487 }
  0xee   : > { %1973 = vmatpush3.bf16.msra.mxu1 %v488_v6  ;;  %v492_v15 = vpop.permute.xlu1 %491 }
  0xef   : > { %1974 = vmatprep.subr.bf16.mxu1 %v2405_v0 }
  0xf1   : > { %v486_v8 = vpop.permute.xlu0 %485 }
  0xf2   : > { %1975 = vmatpush3.bf16.msra.mxu1 %v486_v8 }
  0xf3   : > { %1988 = vmatprep.subr.bf16.mxu1 %v2405_v0 }
  0xf5   : > { %1977 = vmatmul.mubr.msk.bf16.vlgmr.msra.gmra.mxu1 %vm441_vm1, %v420_v9 }
  0xf6   : > { %1990 = vmatprep.mubr.msk.bf16.mxu1 %vm2406_vm0, %v2405_v0 }
 0x142   : > { %v479_v10 = vpop.f32.mrf.mxu0 }
 0x143   : > { %v480_v14 = vadd.f32 %v2655_v4, %v479_v10 }
 0x144   : > { %v1970_v11 = vpop.f32.mrf.mxu0 }
 0x145   : > { %v589_v18 = vmul.f32 0.35355338, %v480_v14  ;;  %v421_v14 = vld [vmem:[%s362_s13] sm:$0xff]  ;;  %s1737_s13 = scalar_lea.sflag [#allocation4], %s2624_s23 }
 0x146   : > { %v482_v12 = vpop.f32.mrf.mxu0  ;;  %v422_v27 = vpack.c.bf16 %v421_v14, %v421_v14 }
 0x147   : > { %v590_v22 = vpack.c.bf16 %v589_v18, %v589_v18 }
 0x148   : > { %v1971_v13 = vpop.f32.mrf.mxu0 }
 0x149   : > { %v604_v53 = vrot.slane %v590_v22, %v2677_v31 }
 0x1b5   : > { %v531_v16 = vpop.f32.mrf.mxu1 }
 0x1b6   : > { %v532_v17 = vadd.f32 %v531_v16, %v492_v15 }
 0x1b7   : > { %v1978_v19 = vpop.f32.mrf.mxu1 }
 0x1b8   : > { %v697_v20 = vpack.c.bf16 %v532_v17, %v532_v17 }
 0x1b9   : > { %v534_v21 = vpop.f32.mrf.mxu1 }
 0x1ba   : > { %701 = vrot.lane.b32.xlu0 %v697_v20, %s2408_s28  ;;  %699 = vrot.lane.b32.xlu1 %v697_v20, %s2409_s29  ;;  %v711_v36 = vrot.slane %v697_v20, %v2677_v31 }
 0x1bb   : > { %v1979_v23 = vpop.f32.mrf.mxu1 }
 0x1be   : > { %703 = vrot.lane.b32.xlu1 %v697_v20, %s2410_s15  ;;  %592 = vrot.lane.b32.xlu0 %v590_v22, %s2409_s29 }
 0x1c2   : > { %594 = vrot.lane.b32.xlu1 %v590_v22, %s2408_s28  ;;  %596 = vrot.lane.b32.xlu0 %v590_v22, %s2410_s15 }
 0x1c6   : > { %539 = vrot.lane.b32.xlu1 %v2152_v1, %s2411_s24  ;;  %537 = vrot.lane.b32.xlu0 %v2153_v2, %s2411_s24 }
 0x22c   : > { %v702_v33 = vpop.permute.xlu0 %701  ;;  %v700_v34 = vpop.permute.xlu1 %699 }
 0x22d   : > { %v719_v37 = vrot.slane %v702_v33, %v2677_v31  ;;  %v745_v45 = vrot.slane %v700_v34, %v2677_v31 }
 0x22f   : > { %v720_v38 = vcombine.low %v711_v36, %v719_v37  ;;  %v721_v39 = vcombine.high %v711_v36, %v719_v37 }
 0x230   : > { %v704_v40 = vpop.permute.xlu1 %703  ;;  %v593_v41 = vpop.permute.xlu0 %592 }
 0x231   : > { %v728_v42 = vrot.slane %v720_v38, %v2679_v35  ;;  %v735_v43 = vrot.slane %v721_v39, %v2679_v35  ;;  %v753_v44 = vrot.slane %v704_v40, %v2677_v31  ;;  %v638_v49 = vrot.slane %v593_v41, %v2677_v31 }
 0x233   : > { %v736_v47 = vcombine.high %v728_v42, %v2414_v46  ;;  %v737_v48 = vcombine.high %v735_v43, %v2414_v46  ;;  %v754_v50 = vcombine.low %v745_v45, %v753_v44  ;;  %v755_v51 = vcombine.high %v745_v45, %v753_v44 }
 0x234   : > { %v595_v52 = vpop.permute.xlu1 %594  ;;  %v597_v54 = vpop.permute.xlu0 %596  ;;  %v776_v55 = vshrl.u32 %v728_v42, 16  ;;  %v792_v56 = vshrl.u32 %v735_v43, 16 }
 0x235   : > { %v612_v57 = vrot.slane %v595_v52, %v2677_v31  ;;  %v646_v58 = vrot.slane %v597_v54, %v2677_v31  ;;  %v784_v59 = vshrl.u32 %v736_v47, 16  ;;  %v800_v60 = vshrl.u32 %v737_v48, 16 }
 0x236   : > { %v762_v61 = vrot.slane %v754_v50, %v2679_v35  ;;  %v769_v62 = vrot.slane %v755_v51, %v2679_v35 }
 0x237   : > { %v613_v63 = vcombine.low %v604_v53, %v612_v57  ;;  %v614_v1 = vcombine.high %v604_v53, %v612_v57  ;;  %v647_v2 = vcombine.low %v638_v49, %v646_v58  ;;  %v648_v3 = vcombine.high %v638_v49, %v646_v58 }
 0x238   : > { %v770_v5 = vcombine.high %v762_v61, %v2414_v46  ;;  %v771_v6 = vcombine.high %v769_v62, %v2414_v46  ;;  %v774_v7 = vpack.i.b16 %v762_v61, %v728_v42  ;;  %v777_v8 = vshrl.u32 %v762_v61, 16  ;;  %v540_v9 = vpop.permute.xlu1 %539  ;;  %v538_v19 = vpop.permute.xlu0 %537 }
 0x239   : > { %v790_v10 = vpack.i.b16 %v769_v62, %v735_v43  ;;  %v793_v11 = vshrl.u32 %v769_v62, 16  ;;  %v621_v12 = vrot.slane %v613_v63, %v2679_v35  ;;  %v628_v13 = vrot.slane %v614_v1, %v2679_v35  ;;  %1981 = vmatpush3.bf16.msra.mxu0 %v540_v9 }
 0x23a   : > { %v778_v15 = vpack.i.b16 %v777_v8, %v776_v55  ;;  %v782_v16 = vpack.i.b16 %v770_v5, %v736_v47  ;;  %v785_v17 = vshrl.u32 %v770_v5, 16  ;;  %v798_v18 = vpack.i.b16 %v771_v6, %v737_v48  ;;  %1982 = vmatprep.subr.bf16.mxu0 %v2405_v0 }
 0x23b   : > { %v794_v20 = vpack.i.b16 %v793_v11, %v792_v56  ;;  %v801_v21 = vshrl.u32 %v771_v6, 16  ;;  %v973_v22 = vcombine.low %v774_v7, %v790_v10  ;;  %v629_v23 = vcombine.high %v621_v12, %v2414_v46 }
 0x23c   : > { %v786_v24 = vpack.i.b16 %v785_v17, %v784_v59  ;;  %v981_v25 = vcombine.low %v782_v16, %v798_v18  ;;  %v630_v26 = vcombine.high %v628_v13, %v2414_v46  ;;  %v669_v32 = vshrl.u32 %v621_v12, 16 }
 0x23d   : > { %v802_v28 = vpack.i.b16 %v801_v21, %v800_v60  ;;  %v980_v29 = vrot.slane %v973_v22, %v2677_v31  ;;  %v998_v30 = vcombine.low %v778_v15, %v794_v20  ;;  %1983 = vmatpush3.bf16.msra.mxu0 %v538_v19  ;;  %v677_v33 = vshrl.u32 %v629_v23, 16 }
 0x23e   : > { %v685_v34 = vshrl.u32 %v628_v13, 16  ;;  %v655_v36 = vrot.slane %v647_v2, %v2679_v35  ;;  %v662_v37 = vrot.slane %v648_v3, %v2679_v35  ;;  %1994 = vmatprep.subr.bf16.mxu0 %v2405_v0  ;;  %v693_v39 = vshrl.u32 %v630_v26, 16 }
 0x23f   : > { %v1006_v38 = vcombine.low %v786_v24, %v802_v28  ;;  %v988_v40 = vrot.slane %v981_v25, %v2677_v31  ;;  %v1005_v41 = vrot.slane %v998_v30, %v2677_v31 }
 0x240   : > { %v663_v42 = vcombine.high %v655_v36, %v2414_v46  ;;  %v664_v43 = vcombine.high %v662_v37, %v2414_v46  ;;  %v667_v44 = vpack.i.b16 %v655_v36, %v621_v12  ;;  %v670_v45 = vshrl.u32 %v655_v36, 16  ;;  %1985 = vmatmul.mubr.msk.bf16.vlgmr.msra.gmra.mxu0 %vm441_vm1, %v422_v27 }
 0x241   : > { %v683_v47 = vpack.i.b16 %v662_v37, %v628_v13  ;;  %v686_v48 = vshrl.u32 %v662_v37, 16  ;;  %v989_v49 = vcombine.low %v980_v29, %v988_v40  ;;  %v1013_v50 = vrot.slane %v1006_v38, %v2677_v31  ;;  %1996 = vmatprep.mubr.msk.bf16.mxu0 %vm2406_vm0, %v2405_v0 }
 0x242   : > { %v671_v51 = vpack.i.b16 %v670_v45, %v669_v32  ;;  %v675_v52 = vpack.i.b16 %v663_v42, %v629_v23  ;;  %v678_v53 = vshrl.u32 %v663_v42, 16  ;;  %v691_v54 = vpack.i.b16 %v664_v43, %v630_v26 }
 0x243   : > { %v687_v55 = vpack.i.b16 %v686_v48, %v685_v34  ;;  %v694_v56 = vshrl.u32 %v664_v43, 16  ;;  %v911_v57 = vcombine.low %v667_v44, %v683_v47  ;;  %v996_v58 = vrot.slane %v989_v49, %v2679_v35 }
 0x244   : > { %v679_v59 = vpack.i.b16 %v678_v53, %v677_v33  ;;  %v919_v60 = vcombine.low %v675_v52, %v691_v54  ;;  %v1014_v61 = vcombine.low %v1005_v41, %v1013_v50 }
 0x245   : > { %v695_v62 = vpack.i.b16 %v694_v56, %v693_v39  ;;  %v936_v63 = vcombine.low %v671_v51, %v687_v55  ;;  %v918_v1 = vrot.slane %v911_v57, %v2677_v31  ;;  %v1026_v6 = vshrl.u32 %v996_v58, 16 }
 0x246   : > { %v926_v2 = vrot.slane %v919_v60, %v2677_v31  ;;  %v1021_v3 = vrot.slane %v1014_v61, %v2679_v35  ;;  %v997_v15 = vcombine.high %v996_v58, %v2414_v46 }
 0x247   : > { %v944_v5 = vcombine.low %v679_v59, %v695_v62  ;;  %v943_v11 = vrot.slane %v936_v63, %v2677_v31 }
 0x248   : > { %v927_v7 = vcombine.low %v918_v1, %v926_v2  ;;  %v1025_v8 = vpack.i.b16 %v1021_v3, %v996_v58  ;;  %v1027_v9 = vshrl.u32 %v1021_v3, 16  ;;  %v1022_v10 = vcombine.high %v1021_v3, %v2414_v46 }
 0x249   : > { %v951_v12 = vrot.slane %v944_v5, %v2677_v31  ;;  %v1032_v22 = vshrl.u32 %v997_v15, 16 }
 0x24a   : > { %v1102_v13 = vsel %vm1097_vm2, %v1025_v8, 0  ;;  %v1028_v14 = vpack.i.b16 %v1027_v9, %v1026_v6  ;;  %v934_v18 = vrot.slane %v927_v7, %v2679_v35  ;;  %v1033_v19 = vshrl.u32 %v1022_v10, 16 }
 0x24b   : > { %v952_v16 = vcombine.low %v943_v11, %v951_v12  ;;  %1989 = vmatpush3.bf16.xpose.msra.mxu1 %v1102_v13  ;;  %v1031_v21 = vpack.i.b16 %v1022_v10, %v997_v15 }
 0x24c   : > { %v1148_v17 = vsel %vm1097_vm2, %v1028_v14, 0  ;;  %2000 = vmatprep.subr.bf16.mxu1 %v2405_v0  ;;  %v964_v25 = vshrl.u32 %v934_v18, 16  ;;  %v1034_v26 = vpack.i.b16 %v1033_v19, %v1032_v22  ;;  %v935_v32 = vcombine.high %v934_v18, %v2414_v46 }
 0x24d   : > { %1995 = vmatpush3.bf16.xpose.msra.mxu0 %v1148_v17  ;;  %v959_v20 = vrot.slane %v952_v16, %v2679_v35  ;;  %v1194_v27 = vsel %vm1097_vm2, %v1031_v21, 0 }
 0x24e   : > { %2006 = vmatprep.subr.bf16.mxu0 %v2405_v0  ;;  %v1240_v30 = vsel %vm1097_vm2, %v1034_v26, 0  ;;  %v970_v36 = vshrl.u32 %v935_v32, 16 }
 0x24f   : > { %v965_v23 = vshrl.u32 %v959_v20, 16  ;;  %v963_v24 = vpack.i.b16 %v959_v20, %v934_v18  ;;  %v960_v29 = vcombine.high %v959_v20, %v2414_v46 }
 0x251   : > { %v966_v28 = vpack.i.b16 %v965_v23, %v964_v25  ;;  %v971_v33 = vshrl.u32 %v960_v29, 16  ;;  %v969_v34 = vpack.i.b16 %v960_v29, %v935_v32 }
 0x252   : > { %1991 = vmatmul.mubr.msk.bf16.vlgmr.msra.gmra.mxu1 %vm1097_vm2, %v963_v24 }
 0x253   : > { %2001 = vmatpush3.bf16.xpose.msra.mxu1 %v1194_v27  ;;  %2002 = vmatprep.mubr.msk.bf16.mxu1 %vm2406_vm0, %v2405_v0  ;;  %v972_v37 = vpack.i.b16 %v971_v33, %v970_v36 }
 0x254   : > { %1997 = vmatmul.mubr.msk.bf16.vlgmr.msra.gmra.mxu0 %vm1097_vm2, %v966_v28  ;;  %2012 = vmatprep.subr.bf16.mxu1 %v2405_v0 }
 0x255   : > { %2007 = vmatpush3.bf16.xpose.msra.mxu0 %v1240_v30  ;;  %2008 = vmatprep.mubr.msk.bf16.mxu0 %vm2406_vm0, %v2405_v0 }
 0x256   : > { %2018 = vmatprep.subr.bf16.mxu0 %v2405_v0 }
 0x25a   : > { %2003 = vmatmul.mubr.msk.bf16.vlgmr.msra.gmra.mxu1 %vm1097_vm2, %v969_v34 }
 0x25b   : > { %2014 = vmatprep.mubr.msk.bf16.mxu1 %vm2406_vm0, %v2405_v0 }
 0x25c   : > { %2009 = vmatmul.mubr.msk.bf16.vlgmr.msra.gmra.mxu0 %vm1097_vm2, %v972_v37 }
 0x25d   : > { %2020 = vmatprep.mubr.msk.bf16.mxu0 %vm2406_vm0, %v2405_v0 }
 0x300   : > { %v583_v38 = vpop.f32.mrf.mxu0 }
 0x302   : > { %v1986_v39 = vpop.f32.mrf.mxu0 }
 0x304   : > { %v586_v40 = vpop.f32.mrf.mxu0 }
 0x306   : > { %v1987_v41 = vpop.f32.mrf.mxu0 }
 0x312   : > { %v1138_v42 = vpop.f32.mrf.mxu1 }
 0x313   : > { %v1282_v43 = vsel %vm1097_vm2, %v1138_v42, -inf }
 0x314   : > { %1283 = vmax.xlane.f32.xlu1 %v1282_v43  ;;  %v1992_v44 = vpop.f32.mrf.mxu1  ;;  %v1184_v45 = vpop.f32.mrf.mxu0 }
 0x315   : > { %v1285_v47 = vsel %vm1097_vm2, %v1184_v45, -inf }
 0x316   : > { %v1141_v48 = vpop.f32.mrf.mxu1  ;;  %1286 = vmax.xlane.f32.xlu0 %v1285_v47  ;;  %v1998_v49 = vpop.f32.mrf.mxu0 }
 0x318   : > { %v1993_v50 = vpop.f32.mrf.mxu1  ;;  %v1187_v51 = vpop.f32.mrf.mxu0 }
 0x31a   : > { %v1999_v52 = vpop.f32.mrf.mxu0  ;;  %v1230_v53 = vpop.f32.mrf.mxu1 }
 0x31b   : > { %v1288_v54 = vsel %vm1097_vm2, %v1230_v53, -inf }
 0x31c   : > { %v2004_v55 = vpop.f32.mrf.mxu1  ;;  %1289 = vmax.xlane.f32.xlu0 %v1288_v54  ;;  %v1276_v56 = vpop.f32.mrf.mxu0 }
 0x31d   : > { %v1291_v57 = vsel %vm1097_vm2, %v1276_v56, -inf }
 0x31e   : > { %v1233_v58 = vpop.f32.mrf.mxu1  ;;  %1292 = vmax.xlane.f32.xlu1 %v1291_v57  ;;  %v2010_v59 = vpop.f32.mrf.mxu0 }
 0x320   : > { %v2005_v60 = vpop.f32.mrf.mxu1  ;;  %v1279_v61 = vpop.f32.mrf.mxu0 }
 0x322   : > { %v2011_v62 = vpop.f32.mrf.mxu0 }
 0x332   : > { %543 = vrot.lane.b32.xlu0 %v2655_v4, %s2411_s24 }
 0x39d   : > { %v1284_v63 = vpop.xlane.xlu1 %1283 }
 0x39e   : > { %v1294_v1 = vsub.f32 %v1138_v42, %v1284_v63 }
 0x39f   : > { %v1287_v2 = vpop.xlane.xlu0 %1286 }
 0x3a0   : > { %v1298_v3 = vmul.f32 1.442695, %v1294_v1  ;;  %v1295_v5 = vsub.f32 %v1184_v45, %v1287_v2 }
 0x3a2   : > { %2156 = vpow2.f32 %v1298_v3  ;;  %v1300_v6 = vmul.f32 1.442695, %v1295_v5 }
 0x3a4   : > { %2158 = vpow2.f32 %v1300_v6 }
 0x3a5   : > { %v1290_v7 = vpop.xlane.xlu0 %1289 }
 0x3a6   : > { %v1296_v19 = vsub.f32 %v1230_v53, %v1290_v7 }
 0x3a7   : > { %v1293_v14 = vpop.xlane.xlu1 %1292 }
 0x3a8   : > { %v1297_v15 = vsub.f32 %v1276_v56, %v1293_v14  ;;  %v1302_v20 = vmul.f32 1.442695, %v1296_v19 }
 0x3a9   : > { %v544_v8 = vpop.permute.xlu0 %543 }
 0x3aa   : > { %v584_v9 = vadd.f32 %v583_v38, %v544_v8  ;;  %v1304_v16 = vmul.f32 1.442695, %v1297_v15 }
 0x3ac   : > { %v804_v10 = vpack.c.bf16 %v584_v9, %v584_v9  ;;  %2160 = vpow2.f32 %v1304_v16 }
 0x3ad   : > { %2162 = vpow2.f32 %v1302_v20 }
 0x3ae   : > { %808 = vrot.lane.b32.xlu0 %v804_v10, %s2408_s28  ;;  %v818_v26 = vrot.slane %v804_v10, %v2677_v31 }
 0x3af   : > { %v2755_v11 = vpop.eup %2156 }
 0x3b0   : > { %v1306_v12 = vsel %vm1097_vm2, %v2755_v11, 0.0 }
 0x3b1   : > { %v2759_v4 = vpop.eup %2158  ;;  %1307 = vadd.xlane.f32.xlu1 %v1306_v12 }
 0x3b2   : > { %810 = vrot.lane.b32.xlu0 %v804_v10, %s2410_s15  ;;  %v1309_v13 = vsel %vm1097_vm2, %v2759_v4, 0.0 }
 0x3b5   : > { %1310 = vadd.xlane.f32.xlu1 %v1309_v13 }
 0x3b9   : > { %v2765_v17 = vpop.eup %2160 }
 0x3ba   : > { %v1315_v18 = vsel %vm1097_vm2, %v2765_v17, 0.0  ;;  %v2769_v21 = vpop.eup %2162 }
 0x3bb   : > { %v1312_v22 = vsel %vm1097_vm2, %v2769_v21, 0.0 }
 0x3c6   : > { %806 = vrot.lane.b32.xlu1 %v804_v10, %s2409_s29 }
 0x3d1   : > { %1316 = vadd.xlane.f32.xlu0 %v1315_v18 }
 0x3ea   : > { %1313 = vadd.xlane.f32.xlu1 %v1312_v22 }
 0x420   : > { %v809_v23 = vpop.permute.xlu0 %808 }
 0x421   : > { %v826_v24 = vrot.slane %v809_v23, %v2677_v31 }
 0x423   : > { %v827_v27 = vcombine.low %v818_v26, %v826_v24  ;;  %v828_v29 = vcombine.high %v818_v26, %v826_v24 }
 0x424   : > { %v811_v30 = vpop.permute.xlu0 %810 }
 0x425   : > { %v835_v32 = vrot.slane %v827_v27, %v2679_v35  ;;  %v860_v34 = vrot.slane %v811_v30, %v2677_v31  ;;  %v842_v37 = vrot.slane %v828_v29, %v2679_v35 }
 0x427   : > { %v843_v40 = vcombine.high %v835_v32, %v2414_v46  ;;  %v844_v43 = vcombine.high %v842_v37, %v2414_v46  ;;  %v883_v44 = vshrl.u32 %v835_v32, 16  ;;  %v899_v51 = vshrl.u32 %v842_v37, 16 }
 0x429   : > { %v891_v50 = vshrl.u32 %v843_v40, 16  ;;  %v907_v58 = vshrl.u32 %v844_v43, 16 }
 0x43a   : > { %v1308_v25 = vpop.xlane.xlu1 %1307 }
 0x43b   : > { %2164 = vrcp.f32 %v1308_v25 }
 0x43e   : > { %v1311_v28 = vpop.xlane.xlu1 %1310 }
 0x43f   : > { %2166 = vrcp.f32 %v1311_v28 }
 0x442   : > { %v807_v33 = vpop.permute.xlu1 %806 }
 0x443   : > { %v852_v36 = vrot.slane %v807_v33, %v2677_v31 }
 0x445   : > { %v861_v38 = vcombine.low %v852_v36, %v860_v34  ;;  %v862_v39 = vcombine.high %v852_v36, %v860_v34 }
 0x447   : > { %v869_v41 = vrot.slane %v861_v38, %v2679_v35  ;;  %v876_v42 = vrot.slane %v862_v39, %v2679_v35 }
 0x448   : > { %v2165_v12 = vpop.eup %2164 }
 0x449   : > { %v877_v45 = vcombine.high %v869_v41, %v2414_v46  ;;  %v878_v47 = vcombine.high %v876_v42, %v2414_v46  ;;  %v881_v48 = vpack.i.b16 %v869_v41, %v835_v32  ;;  %v884_v49 = vshrl.u32 %v869_v41, 16 }
 0x44a   : > { %v897_v52 = vpack.i.b16 %v876_v42, %v842_v37  ;;  %v900_v53 = vshrl.u32 %v876_v42, 16  ;;  %v1322_v18 = vmul.f32 %v2165_v12, %v2755_v11 }
 0x44b   : > { %v885_v54 = vpack.i.b16 %v884_v49, %v883_v44  ;;  %v889_v55 = vpack.i.b16 %v877_v45, %v843_v40  ;;  %v892_v56 = vshrl.u32 %v877_v45, 16  ;;  %v905_v57 = vpack.i.b16 %v878_v47, %v844_v43 }
 0x44c   : > { %v901_v59 = vpack.i.b16 %v900_v53, %v899_v51  ;;  %v908_v60 = vshrl.u32 %v878_v47, 16  ;;  %v1035_v61 = vcombine.low %v881_v48, %v897_v52  ;;  %v2167_v14 = vpop.eup %2166  ;;  %v1326_v33 = vpack.c.bf16 %v1322_v18, %v1322_v18 }
 0x44d   : > { %v893_v62 = vpack.i.b16 %v892_v56, %v891_v50  ;;  %v1043_v63 = vcombine.low %v889_v55, %v905_v57  ;;  %v1323_v24 = vmul.f32 %v2167_v14, %v2759_v4 }
 0x44e   : > { %v909_v1 = vpack.i.b16 %v908_v60, %v907_v58  ;;  %v1060_v2 = vcombine.low %v885_v54, %v901_v59  ;;  %v1042_v3 = vrot.slane %v1035_v61, %v2677_v31 }
 0x44f   : > { %v1050_v5 = vrot.slane %v1043_v63, %v2677_v31  ;;  %v1327_v4 = vpack.c.bf16 %v1323_v24, %v1323_v24  ;;  %v2155_v24 = vld [vmem:[#allocation10] sm:$0xff]  }
 0x450   : > { %v1068_v6 = vcombine.low %v893_v62, %v909_v1  ;;  %v1067_v8 = vrot.slane %v1060_v2, %v2677_v31 }
 0x451   : > { %v1051_v7 = vcombine.low %v1042_v3, %v1050_v5 }
 0x452   : > { %v1075_v9 = vrot.slane %v1068_v6, %v2677_v31 }
 0x453   : > { %v1058_v10 = vrot.slane %v1051_v7, %v2679_v35 }
 0x454   : > { %v1076_v13 = vcombine.low %v1067_v8, %v1075_v9  ;;  %v2154_v8 = vld [vmem:[#allocation10 + $0x8] sm:$0xff]  }
 0x455   : > { %v1059_v15 = vcombine.high %v1058_v10, %v2414_v46  ;;  %v1088_v20 = vshrl.u32 %v1058_v10, 16 }
 0x456   : > { %v1083_v16 = vrot.slane %v1076_v13, %v2679_v35 }
 0x457   : > { %v1094_v25 = vshrl.u32 %v1059_v15, 16 }
 0x458   : > { %v1087_v19 = vpack.i.b16 %v1083_v16, %v1058_v10  ;;  %v1089_v22 = vshrl.u32 %v1083_v16, 16  ;;  %v1084_v23 = vcombine.high %v1083_v16, %v2414_v46 }
 0x45a   : > { %v1317_v26 = vpop.xlane.xlu0 %1316  ;;  %v1335_v27 = vsel %vm1333_vm3, %v1087_v19, 0  ;;  %v1090_v28 = vpack.i.b16 %v1089_v22, %v1088_v20  ;;  %v1093_v29 = vpack.i.b16 %v1084_v23, %v1059_v15  ;;  %v1095_v30 = vshrl.u32 %v1084_v23, 16 }
 0x45b   : > { %2168 = vrcp.f32 %v1317_v26  ;;  %2013 = vmatpush3.bf16.msra.mxu1 %v1335_v27 }
 0x45c   : > { %v1381_v32 = vsel %vm1333_vm3, %v1090_v28, 0  ;;  %2024 = vmatprep.subr.bf16.mxu1 %v2405_v0  ;;  %v1096_v11 = vpack.i.b16 %v1095_v30, %v1094_v25  ;;  %v1427_v46 = vsel %vm1333_vm3, %v1093_v29, 0 }
 0x45d   : > { %2019 = vmatpush3.bf16.msra.mxu0 %v1381_v32 }
 0x45e   : > { %2015 = vmatmul.mubr.msk.bf16.vlgmr.msra.gmra.mxu1 %vm1097_vm2, %v1326_v33  ;;  %2030 = vmatprep.subr.bf16.mxu0 %v2405_v0  ;;  %v1473_v34 = vsel %vm1333_vm3, %v1096_v11, 0 }
 0x45f   : > { %2025 = vmatpush3.bf16.msra.mxu1 %v1427_v46  ;;  %2026 = vmatprep.mubr.msk.bf16.mxu1 %vm2406_vm0, %v2405_v0 }
 0x460   : > { %2021 = vmatmul.mubr.msk.bf16.vlgmr.msra.gmra.mxu0 %vm1097_vm2, %v1327_v4  ;;  %2036 = vmatprep.subr.bf16.mxu1 %v2405_v0 }
 0x461   : > { %2031 = vmatpush3.bf16.msra.mxu0 %v1473_v34  ;;  %2032 = vmatprep.mubr.msk.bf16.mxu0 %vm2406_vm0, %v2405_v0 }
 0x468   : > { %v2169_v36 = vpop.eup %2168 }
 0x469   : > { %v1325_v37 = vmul.f32 %v2169_v36, %v2765_v17 }
 0x46b   : > { %v1329_v38 = vpack.c.bf16 %v1325_v37, %v1325_v37 }
 0x46d   : > { %2033 = vmatmul.mubr.msk.bf16.vlgmr.msra.gmra.mxu0 %vm1097_vm2, %v1329_v38 }
 0x473   : > { %v1314_v39 = vpop.xlane.xlu1 %1313 }
 0x474   : > { %2170 = vrcp.f32 %v1314_v39 }
 0x481   : > { %v2171_v40 = vpop.eup %2170 }
 0x482   : > { %v1324_v41 = vmul.f32 %v2171_v40, %v2769_v21  ;;  %v1928_v40 = vld [vmem:[%s2896_s6] ss:$0 sm:$0xff] }
 0x484   : > { %v1328_v42 = vpack.c.bf16 %v1324_v41, %v1324_v41 }
 0x486   : > { %2027 = vmatmul.mubr.msk.bf16.vlgmr.msra.gmra.mxu1 %vm1097_vm2, %v1328_v42 }
 0x487   : > { %2040 = vmatprep.mubr.msk.bf16.mxu1 %vm2406_vm0, %v2405_v0  ;;  %2037 = vmatpush3.bf16.msra.mxu1 %v2154_v8 }
 0x488   : > { %2038 = vmatprep.subr.bf16.mxu1 %v2405_v0 }
 0x48b   : > { %2039 = vmatpush3.bf16.msra.mxu1 %v2155_v24 }
 0x51e   : > { %v1371_v43 = vpop.f32.mrf.mxu1 }
 0x520   : > { %v2016_v44 = vpop.f32.mrf.mxu1  ;;  %v1417_v45 = vpop.f32.mrf.mxu0 }
 0x522   : > { %v1374_v47 = vpop.f32.mrf.mxu1  ;;  %v2022_v48 = vpop.f32.mrf.mxu0 }
 0x524   : > { %v2017_v17 = vpop.f32.mrf.mxu1  ;;  %v1420_v49 = vpop.f32.mrf.mxu0 }
 0x526   : > { %v2023_v50 = vpop.f32.mrf.mxu0 }
 0x52d   : > { %v1509_v51 = vpop.f32.mrf.mxu0 }
 0x52e   : > { %v1531_v55 = vcombine.low %v1417_v45, %v1509_v51  ;;  %v1532_v21 = vcombine.high %v1417_v45, %v1509_v51 }
 0x52f   : > { %v2034_v52 = vpop.f32.mrf.mxu0 }
 0x530   : > { %v1539_v60 = vrot.slane %v1531_v55, %v2677_v31  ;;  %v1546_v61 = vrot.slane %v1532_v21, %v2677_v31 }
 0x531   : > { %v1512_v53 = vpop.f32.mrf.mxu0 }
 0x533   : > { %v2035_v54 = vpop.f32.mrf.mxu0 }
 0x546   : > { %v1463_v56 = vpop.f32.mrf.mxu1 }
 0x547   : > { %v1515_v57 = vcombine.low %v1371_v43, %v1463_v56  ;;  %v1516_v58 = vcombine.high %v1371_v43, %v1463_v56 }
 0x548   : > { %v2028_v59 = vpop.f32.mrf.mxu1 }
 0x549   : > { %v1523_v62 = vrot.slane %v1515_v57, %v2677_v31  ;;  %v1530_v63 = vrot.slane %v1516_v58, %v2677_v31 }
 0x54a   : > { %v1466_v1 = vpop.f32.mrf.mxu1 }
 0x54b   : > { %v1547_v2 = vcombine.low %v1523_v62, %v1539_v60  ;;  %v1548_v3 = vcombine.high %v1523_v62, %v1539_v60  ;;  %v1563_v5 = vcombine.low %v1530_v63, %v1546_v61  ;;  %v1564_v6 = vcombine.high %v1530_v63, %v1546_v61 }
 0x54c   : > { %v2029_v7 = vpop.f32.mrf.mxu1 }
 0x54d   : > { %v1555_v9 = vrot.slane %v1547_v2, %v2679_v35  ;;  %v1562_v10 = vrot.slane %v1548_v3, %v2679_v35  ;;  %v1571_v12 = vrot.slane %v1563_v5, %v2679_v35  ;;  %v1578_v13 = vrot.slane %v1564_v6, %v2679_v35 }
 0x54f   : > { %v1583_v14 = vcombine.low %v1555_v9, %v1562_v10  ;;  %v1926_v15 = vcombine.high %v1555_v9, %v1562_v10  ;;  %v1599_v16 = vcombine.low %v1571_v12, %v1578_v13  ;;  %v1927_v18 = vcombine.high %v1571_v12, %v1578_v13 }
 0x551   : > { %v1590_v19 = vrot.slane %v1583_v14, %v2677_v31  ;;  %v1598_v20 = vrot.slane %v1926_v15, %v2677_v31  ;;  %v1606_v22 = vrot.slane %v1599_v16, %v2677_v31  ;;  %v1614_v23 = vrot.slane %v1927_v18, %v2677_v31 }
 0x553   : > { %v1616_v25 = vcombine.high %v1590_v19, %v1598_v20  ;;  %v1632_v26 = vcombine.high %v1606_v22, %v1614_v23  ;;  %v1615_v27 = vcombine.low %v1590_v19, %v1598_v20  ;;  %v1631_v28 = vcombine.low %v1606_v22, %v1614_v23 }
 0x555   : > { %v1630_v29 = vrot.slane %v1616_v25, %v2679_v35  ;;  %v1646_v30 = vrot.slane %v1632_v26, %v2679_v35  ;;  %v1623_v0 = vrot.slane %v1615_v27, %v2679_v35  ;;  %v1639_v32 = vrot.slane %v1631_v28, %v2679_v35 }
 0x557   : > { %v1649_v33 = vcombine.low %v1630_v29, %v1646_v30  ;;  %v1648_v11 = vcombine.high %v1623_v0, %v1639_v32  ;;  %v1647_v46 = vcombine.low %v1623_v0, %v1639_v32  ;;  %v1650_v31 = vcombine.high %v1630_v29, %v1646_v30 }
 0x559   : > { %1656 = vrot.lane.b32.xlu1 %v1649_v33, %s2415_s16  ;;  %1652 = vrot.lane.b32.xlu0 %v1648_v11, %s2416_s8 }
 0x55d   : > { %1660 = vrot.lane.b32.xlu1 %v1650_v31, %s2417_s20 }
 0x5cb   : > { %v1657_v4 = vpop.permute.xlu1 %1656  ;;  %v1653_v34 = vpop.permute.xlu0 %1652 }
 0x5cc   : > { %v1663_v36 = vsel %vm1097_vm2, %v1647_v46, %v1653_v34 }
 0x5cd   : > { %v1665_v35 = vsel %vm1664_vm4, %v1663_v36, %v1657_v4 }
 0x5cf   : > { %v1661_v37 = vpop.permute.xlu1 %1660 }
 0x5d0   : > { %v1667_v38 = vsel %vm1666_vm5, %v1665_v35, %v1661_v37 }
 0x5d1   : > { %v1668_v39 = vpack.c.bf16 %v1667_v38, %v1667_v38 }
 0x5d3   : > { %2041 = vmatmul.mubr.msk.bf16.vlgmr.msra.gmra.mxu1 %vm441_vm1, %v1668_v39 }
 0x693   : > { %v1729_v41 = vpop.f32.mrf.mxu1 }
 0x694   : > { %v1730_v42 = vadd.f32 %v1928_v40, %v1729_v41 }
 0x695   : > { %v2042_v43 = vpop.f32.mrf.mxu1 }
 0x696   : > { %1735 = vst.msk [vmem:[%s410_s12] sm:$0xff] %vm441_vm1, %v1730_v42 }
 0x697   : > { %v1732_v44 = vpop.f32.mrf.mxu1 }
 0x698   : > { %2321 = shalt.err (!%p2318_p1)
}
 0x699   : > { %s2322_s18 = scalar_lea.hbm %s2841_s11, 128  ;;  %s2326_s29 = scalar_lea.hbm %s2942_s10, 256 }
 0x69a   : > { %p2323_p4 = scmp.ne.s32.totalorder %s2841_s11, %s2322_s18  ;;  %p2327_p11 = scmp.lt.s32.totalorder %s2841_s11, %s2942_s10 }
 0x69b   : > { %p2328_p2 = scmp.lt.s32.totalorder %s2326_s29, %s2322_s18 }
 0x69c   : > { %p2324_p6 = pnand %p2323_p4, %p2943_p9 }
 0x69d   : > { %p2329_p12 = por %p2328_p2, %p2327_p11 }
 0x69e   : > { %p2325_p8 = pneg %p2324_p6 }
 0x6a0   : > { %p2330_p3 = pnand %p2329_p12, %p2325_p8 }
 0x6a2   : > { %2333 = shalt.err (!%p2330_p3)
}
 0x6a3   : > { %2058 = dma.vmem_to_hbm [thread:$0]  (%p2943_p9), %s2843_s19, 128, %s2841_s11, %s1737_s13   ;;  %v2043_v45 = vpop.f32.mrf.mxu1 }
 0x6a4 PF: > { %s2944_s16 = sld [smem:[#allocation16_spill]] }
 0x6a5   : > { %s2945_s8 = sld [smem:[#allocation19_spill]] }
 0x6a6   : > { %s2946_s20 = sld [smem:[#allocation18_spill]] }
 0x6aa   : > { %s1763_s21 = sand.u32 1, %s2944_s16  }
 0x6ab   : > { %p2947_p0 = scmp.ne.s32.totalorder %s2945_s8, 0  ;;  %s1764_s14 = scalar_lea.sflag [#allocation4], %s1763_s21 }
 0x6ac   : > { %p2948_p7 = scmp.ge.s32.totalorder %s2946_s20, 2 }
 0x6ae   : > { %p2078_p10 = pnand %p2948_p7, %p2947_p0 }
 0x6b0   : > { %p2079_p13 = pneg %p2078_p10 }
 0x6b2   : > { %2371 = dma.done.wait (%p2079_p13), %s1764_s14, 128  }
 0x6b3   : > { %2373 = vsyncadd (%p2079_p13), %s1764_s14, 4294967168  ;;  %s27_s29 = sadd.s32 1, %s2946_s20   ;;  %s2949_s22 = sld [smem:[#allocation21_spill]] }
 0x6b4   : > { %p24_p5 = scmp.ge.s32.totalorder %s27_s29, 4   ;;  %s2950_s27 = sld [smem:[#allocation17_spill]] }
 0x6b5   : > { %s2951_s28 = sld [smem:[#allocation20_spill]]  ;;  %s2952_s24 = smov %s2380_s25 }
 0x6b6   : > { %s2953_s25 = smov %s2384_s26  ;;  %26 = sbr.rel (!%p24_p5) target bundleno = 13 (0xd), region = 125 }
 0x6b9   : > { %s2954_s26 = smov %s2949_s22 }
 0x6bb   :  { %1769 = vsyncpa [#allocation3], 1 }
 0x6bc   :  { %1771 = vsyncpa [#allocation3 + $0x1], 1 }
 0x6bd   :  { %1772 = vsyncpa [#allocation6], 1 }
 0x6be   :  { %1774 = vsyncpa [#allocation6 + $0x1], 1 }
 0x6bf   :  { %1775 = vsyncpa [#allocation9], 1 }
 0x6c0   :  { %1776 = vsyncpa [#allocation4], 1 }
 0x6c1   :  { %1778 = vsyncpa [#allocation4 + $0x1], 1 }

</bundles_post_ra>
